<compile_context>
chip_gen: v7x
topology: tpu7x:2x2x1
jax: 0.10.0
libtpu: 0.0.40
codegen_flags: <defaults>
</compile_context>

<pallas_src>
import functools

import jax
import jax.numpy as jnp
from jax.experimental import pallas as pl
from jax.experimental.pallas import tpu as pltpu


# --------------------------------------------------------------------------
# Pass 1: pooling kernel.  grid = (B, S // TS); the spatial axis is a
# reduction ("arbitrary", last), the batch axis is "parallel".  The output
# block index is constant across the S axis -> accumulator resident in VMEM.
#   x_ref   : (1, C, TS)   channel-first, spatial flattened onto lanes
#   sum_ref : (1, C, 1)    f32 per-channel partial sums
# --------------------------------------------------------------------------
def _pool_kernel(x_ref, sum_ref):
    @pl.when(pl.program_id(1) == 0)
    def _():
        sum_ref[...] = jnp.zeros_like(sum_ref)

    x = x_ref[0].astype(jnp.float32)                     # (C, TS)
    sum_ref[0] += jnp.sum(x, axis=1, keepdims=True)      # lane (XLU) reduce, f32 acc


# --------------------------------------------------------------------------
# Pass 2: gated-apply kernel.  grid = (B, S // TS), both axes "parallel".
#   x_ref : (1, C, TS)    g_ref : (1, C, 1) f32 channel gate (precomputed)
#   ws_ref: (C, 1)        bs_ref: (1, 1)    sSE 1x1x1 conv weight / bias
#   o_ref : (1, C, TS)
# sSE logit accumulates in f32; gating multiplies / max / store run in the
# input dtype (bf16 I/O halves HBM traffic on v6e/v7x).
# --------------------------------------------------------------------------
def _apply_kernel(x_ref, g_ref, ws_ref, bs_ref, o_ref):
    x = x_ref[0]                                          # (C, TS), native dtype
    xf = x.astype(jnp.float32)

    # sSE: 1x1x1 conv (C -> 1) + sigmoid, sublane reduction in f32.
    # TODO(synk): on v7x this could be an MXU matvec jnp.dot(ws.T, x) instead.
    s_logit = jnp.sum(xf * ws_ref[...], axis=0, keepdims=True) + bs_ref[...]  # (1, TS)
    s_gate = jax.nn.sigmoid(s_logit).astype(x.dtype)      # spatial gate
    g = g_ref[0].astype(x.dtype)                          # (C, 1) channel gate

    o_ref[0] = jnp.maximum(x * g, x * s_gate).astype(o_ref.dtype)


def _pick_spatial_tile(S, C, itemsize, max_block_bytes=4 << 20, max_tile=32768):
    """Largest divisor of S keeping one (C, TS) block under max_block_bytes
    (and <= max_tile lanes), preferring multiples of 128 for lane-dense stores."""
    cap = max(1, min(max_tile, max_block_bytes // max(1, C * itemsize)))
    if S <= cap:
        return S
    best, best128 = 1, 0
    i = 1
    while i * i <= S:
        if S % i == 0:
            for d in (i, S // i):
                if d <= cap:
                    if d > best:
                        best = d
                    if d % 128 == 0 and d > best128:
                        best128 = d
        i += 1
    # TODO(synk): for pathological (e.g. prime) S, use a padded / BoundedSlice
    # path instead of a tiny divisor.
    return best128 if best128 else best


def channel_spatial_se_3d(x, params, *, tile_spatial=None):
    """ChannelSpatialSELayer3D forward.  x: (B, C, D, H, W), same layout as PyTorch."""
    B, C, D, H, W = x.shape
    S = D * H * W
    xr = x.reshape(B, C, S)                 # free reshape: spatial onto the lane axis
    itemsize = jnp.dtype(x.dtype).itemsize

    if tile_spatial is None:
        TS = _pick_spatial_tile(S, C, itemsize)
    else:
        TS = int(tile_spatial)
        if S % TS != 0:
            raise ValueError("tile_spatial must divide D*H*W")
    nS = S // TS

    # 2x double-buffered input + 2x output + tiny weight blocks + headroom.
    # Explicit so double-buffering survives v5e's 16 MiB default scoped limit
    # and stays under v7x's 64 MiB physical VMEM.
    block_bytes = C * TS * itemsize
    vmem_limit = int(min(64 << 20, max(32 << 20, 6 * block_bytes + (2 << 20))))

    # ---- pass 1: per-(batch, channel) sums over the spatial axis ----
    sums = pl.pallas_call(
        _pool_kernel,
        out_shape=jax.ShapeDtypeStruct((B, C, 1), jnp.float32),
        grid=(B, nS),
        in_specs=[pl.BlockSpec((1, C, TS), lambda b, s: (b, 0, s))],
        out_specs=pl.BlockSpec((1, C, 1), lambda b, s: (b, 0, 0)),
        compiler_params=pltpu.CompilerParams(
            dimension_semantics=("parallel", "arbitrary"),
            vmem_limit_bytes=vmem_limit),
    )(xr)

    # ---- channel gate (cSE squeeze MLP): microscopic, plain XLA ----
    hp = jax.lax.Precision.HIGHEST
    mean = sums[:, :, 0] * (1.0 / S)                                         # (B, C)
    h = jax.nn.relu(jnp.dot(mean, params["fc1_w"].T, precision=hp)
                    + params["fc1_b"][:, 0])
    g = jax.nn.sigmoid(jnp.dot(h, params["fc2_w"].T, precision=hp)
                       + params["fc2_b"][:, 0])
    g = g[:, :, None].astype(jnp.float32)                                    # (B, C, 1)

    # ---- pass 2: sSE gate + max(cSE(x), sSE(x)), lane-tiled ----
    out = pl.pallas_call(
        _apply_kernel,
        out_shape=jax.ShapeDtypeStruct((B, C, S), x.dtype),
        grid=(B, nS),
        in_specs=[
            pl.BlockSpec((1, C, TS), lambda b, s: (b, 0, s)),
            pl.BlockSpec((1, C, 1), lambda b, s: (b, 0, 0)),
            pl.BlockSpec((C, 1), lambda b, s: (0, 0)),
            pl.BlockSpec((1, 1), lambda b, s: (0, 0)),
        ],
        out_specs=pl.BlockSpec((1, C, TS), lambda b, s: (b, 0, s)),
        compiler_params=pltpu.CompilerParams(
            dimension_semantics=("parallel", "parallel"),
            vmem_limit_bytes=vmem_limit),
    )(xr, g, params["sse_w"], params["sse_b"])
    return out.reshape(B, C, D, H, W)


# --------------------------------------------------------------------------
# Pure-JAX reference (correctness guard) and parameter init.
# --------------------------------------------------------------------------
def _reference(x, p):
    hp = jax.lax.Precision.HIGHEST
    z = jnp.mean(x, axis=(2, 3, 4))                                          # (B, C)
    h = jax.nn.relu(jnp.dot(z, p["fc1_w"].T, precision=hp) + p["fc1_b"][:, 0])
    g = jax.nn.sigmoid(jnp.dot(h, p["fc2_w"].T, precision=hp) + p["fc2_b"][:, 0])
    cse = x * g[:, :, None, None, None]
    s_logit = jnp.einsum("bcdhw,c->bdhw", x, p["sse_w"][:, 0], precision=hp)
    s_gate = jax.nn.sigmoid(s_logit + p["sse_b"][0, 0])
    sse = x * s_gate[:, None]
    return jnp.maximum(cse, sse)


def init_params(key, num_channels, reduction_ratio=2):
    C = num_channels
    R = C // reduction_ratio
    k = jax.random.split(key, 6)
    return {
        "fc1_w": jax.random.normal(k[0], (R, C), jnp.float32) * (1.0 / C) ** 0.5,
        "fc1_b": jax.random.normal(k[1], (R, 1), jnp.float32) * 0.05,
        "fc2_w": jax.random.normal(k[2], (C, R), jnp.float32) * (1.0 / R) ** 0.5,
        "fc2_b": jax.random.normal(k[3], (C, 1), jnp.float32) * 0.05,
        "sse_w": jax.random.normal(k[4], (C, 1), jnp.float32) * (1.0 / C) ** 0.5,
        "sse_b": jax.random.normal(k[5], (1, 1), jnp.float32) * 0.05,
    }


if __name__ == "__main__":
    key = jax.random.PRNGKey(0)
    kp, kx = jax.random.split(key)

    B, C, D, H, W = 2, 16, 16, 16, 16          # small test shape; S = 4096
    params = init_params(kp, C, reduction_ratio=2)
    x = jax.random.normal(kx, (B, C, D, H, W), jnp.float32)

    # tile_spatial=1024 -> grid (2, 4) per pass at this toy size (exercises tiling).
    fwd = jax.jit(functools.partial(channel_spatial_se_3d, tile_spatial=1024))

    out = fwd(x, params)
    jax.block_until_ready(out)
    assert out.shape == (B, C, D, H, W)
    assert bool(jnp.all(jnp.isfinite(out)))
    ref = _reference(x, params)
    err = float(jnp.max(jnp.abs(out - ref)))
    assert err < 2e-3, f"f32 max abs error vs reference: {err}"

    # bf16 I/O path (halves HBM traffic on v6e/v7x); gate math stays f32.
    xb = x.astype(jnp.bfloat16)
    outb = fwd(xb, params)
    jax.block_until_ready(outb)
    refb = _reference(xb.astype(jnp.float32), params)
    errb = float(jnp.max(jnp.abs(outb.astype(jnp.float32) - refb)))
    assert errb < 5e-2, f"bf16 max abs error vs reference: {errb}"

    print("KERNEL_OK")
</pallas_src>

<mosaic_0001>
module attributes {stable_mosaic.version = 11 : i64} {
  func.func @_pool_kernel(%arg0: i32, %arg1: i32, %arg2: memref<1x16x1024xf32, #tpu.memory_space<vmem>>, %arg3: memref<1x16x1xf32, #tpu.memory_space<vmem>>) attributes {dimension_semantics = [#tpu.dimension_semantics<parallel>, #tpu.dimension_semantics<arbitrary>], iteration_bounds = array<i64: 2, 4>, scalar_prefetch = 0 : i64, scratch_operands = 0 : i64, tpu.core_type = #tpu.core_type<tc>, window_params = [{transform_indices = @transform_0, window_bounds = array<i64: 1, 16, 1024>}, {transform_indices = @transform_1, window_bounds = array<i64: 1, 16, 1>}]} {
    %c0_i32 = arith.constant 0 : i32
    %0 = arith.cmpi eq, %arg1, %c0_i32 : i32
    %1 = arith.extui %0 : i1 to i32
    %c0_i32_0 = arith.constant 0 : i32
    %2 = arith.cmpi ne, %1, %c0_i32_0 : i32
    scf.if %2 {
      %cst_9 = arith.constant 0.000000e+00 : f32
      %13 = vector.broadcast %cst_9 : f32 to vector<1x16x1xf32>
      %c0_10 = arith.constant 0 : index
      %c0_11 = arith.constant 0 : index
      %c0_12 = arith.constant 0 : index
      %14 = vector.load %arg3[%c0_10, %c0_11, %c0_12] : memref<1x16x1xf32, #tpu.memory_space<vmem>>, vector<1x16x1xf32>
      tpu.vector_store %arg3[%c0_10, %c0_11, %c0_12], %13 {strides = array<i32>} : memref<1x16x1xf32, #tpu.memory_space<vmem>>, vector<1x16x1xf32>,
    } else {
    }
    %c0 = arith.constant 0 : index
    %c0_1 = arith.constant 0 : index
    %c0_2 = arith.constant 0 : index
    %3 = vector.load %arg2[%c0, %c0_1, %c0_2] : memref<1x16x1024xf32, #tpu.memory_space<vmem>>, vector<1x16x1024xf32>
    %4 = vector.shape_cast %3 : vector<1x16x1024xf32> to vector<16x1024xf32>
    %c0_3 = arith.constant 0 : index
    %c0_4 = arith.constant 0 : index
    %c0_5 = arith.constant 0 : index
    %5 = vector.load %arg3[%c0_3, %c0_4, %c0_5] : memref<1x16x1xf32, #tpu.memory_space<vmem>>, vector<1x16x1xf32>
    %6 = vector.shape_cast %5 : vector<1x16x1xf32> to vector<16x1xf32>
    %cst = arith.constant dense<0.000000e+00> : vector<16xf32>
    %7 = vector.multi_reduction <add>, %4, %cst [1] : vector<16x1024xf32> to vector<16xf32>
    %8 = vector.shape_cast %7 : vector<16xf32> to vector<16x1xf32>
    %9 = arith.addf %6, %8 : vector<16x1xf32>
    %c0_6 = arith.constant 0 : index
    %c0_7 = arith.constant 0 : index
    %c0_8 = arith.constant 0 : index
    %10 = vector.load %arg3[%c0_6, %c0_7, %c0_8] : memref<1x16x1xf32, #tpu.memory_space<vmem>>, vector<1x16x1xf32>
    %11 = vector.shape_cast %10 : vector<1x16x1xf32> to vector<16x1xf32>
    %12 = vector.shape_cast %9 : vector<16x1xf32> to vector<1x16x1xf32>
    tpu.vector_store %arg3[%c0_6, %c0_7, %c0_8], %12 {strides = array<i32>} : memref<1x16x1xf32, #tpu.memory_space<vmem>>, vector<1x16x1xf32>,
    return
  }
  func.func @transform_0(%arg0: i32, %arg1: i32) -> (i32, i32, i32) {
    %c0_i32 = arith.constant 0 : i32
    %c0_i32_0 = arith.constant 0 : i32
    return %arg0, %c0_i32, %arg1 : i32, i32, i32
  }
  func.func @transform_1(%arg0: i32, %arg1: i32) -> (i32, i32, i32) {
    %c0_i32 = arith.constant 0 : i32
    %c0_i32_0 = arith.constant 0 : i32
    %c0_i32_1 = arith.constant 0 : i32
    return %arg0, %c0_i32, %c0_i32_0 : i32, i32, i32
  }
}

module attributes {stable_mosaic.version = 11 : i64} {
  func.func @_apply_kernel(%arg0: i32, %arg1: i32, %arg2: memref<1x16x1024xf32, #tpu.memory_space<vmem>>, %arg3: memref<1x16x1xf32, #tpu.memory_space<vmem>>, %arg4: memref<16x1xf32, #tpu.memory_space<vmem>>, %arg5: memref<1x1xf32, #tpu.memory_space<vmem>>, %arg6: memref<1x16x1024xf32, #tpu.memory_space<vmem>>) attributes {dimension_semantics = [#tpu.dimension_semantics<parallel>, #tpu.dimension_semantics<parallel>], iteration_bounds = array<i64: 2, 4>, scalar_prefetch = 0 : i64, scratch_operands = 0 : i64, tpu.core_type = #tpu.core_type<tc>, window_params = [{transform_indices = @transform_0, window_bounds = array<i64: 1, 16, 1024>}, {transform_indices = @transform_1, window_bounds = array<i64: 1, 16, 1>}, {pipeline_mode = #tpu.pipeline_mode<synchronous>, transform_indices = @transform_2, window_bounds = array<i64: 16, 1>}, {pipeline_mode = #tpu.pipeline_mode<synchronous>, transform_indices = @transform_3, window_bounds = array<i64: 1, 1>}, {transform_indices = @transform_4, window_bounds = array<i64: 1, 16, 1024>}]} {
    %c0 = arith.constant 0 : index
    %c0_0 = arith.constant 0 : index
    %c0_1 = arith.constant 0 : index
    %0 = vector.load %arg2[%c0, %c0_0, %c0_1] : memref<1x16x1024xf32, #tpu.memory_space<vmem>>, vector<1x16x1024xf32>
    %1 = vector.shape_cast %0 : vector<1x16x1024xf32> to vector<16x1024xf32>
    %c0_2 = arith.constant 0 : index
    %c0_3 = arith.constant 0 : index
    %2 = vector.load %arg4[%c0_2, %c0_3] : memref<16x1xf32, #tpu.memory_space<vmem>>, vector<16x1xf32>
    %3 = vector.broadcast %2 : vector<16x1xf32> to vector<16x1024xf32>
    %4 = arith.mulf %1, %3 : vector<16x1024xf32>
    %cst = arith.constant dense<0.000000e+00> : vector<1024xf32>
    %5 = vector.multi_reduction <add>, %4, %cst [0] : vector<16x1024xf32> to vector<1024xf32>
    %6 = vector.shape_cast %5 : vector<1024xf32> to vector<1x1024xf32>
    %c0_4 = arith.constant 0 : index
    %c0_5 = arith.constant 0 : index
    %7 = vector.load %arg5[%c0_4, %c0_5] : memref<1x1xf32, #tpu.memory_space<vmem>>, vector<1x1xf32>
    %8 = vector.broadcast %7 : vector<1x1xf32> to vector<1x1024xf32>
    %9 = arith.addf %6, %8 : vector<1x1024xf32>
    %10 = arith.negf %9 : vector<1x1024xf32>
    %11 = math.exp %10 : vector<1x1024xf32>
    %cst_6 = arith.constant 1.000000e+00 : f32
    %12 = vector.broadcast %cst_6 : f32 to vector<1x1024xf32>
    %13 = arith.addf %12, %11 : vector<1x1024xf32>
    %14 = arith.divf %12, %13 : vector<1x1024xf32>
    %c0_7 = arith.constant 0 : index
    %c0_8 = arith.constant 0 : index
    %c0_9 = arith.constant 0 : index
    %15 = vector.load %arg3[%c0_7, %c0_8, %c0_9] : memref<1x16x1xf32, #tpu.memory_space<vmem>>, vector<1x16x1xf32>
    %16 = vector.shape_cast %15 : vector<1x16x1xf32> to vector<16x1xf32>
    %17 = vector.broadcast %16 : vector<16x1xf32> to vector<16x1024xf32>
    %18 = arith.mulf %1, %17 : vector<16x1024xf32>
    %19 = vector.broadcast %14 : vector<1x1024xf32> to vector<16x1024xf32>
    %20 = arith.mulf %1, %19 : vector<16x1024xf32>
    %21 = arith.maximumf %18, %20 : vector<16x1024xf32>
    %c0_10 = arith.constant 0 : index
    %c0_11 = arith.constant 0 : index
    %c0_12 = arith.constant 0 : index
    %22 = vector.load %arg6[%c0_10, %c0_11, %c0_12] : memref<1x16x1024xf32, #tpu.memory_space<vmem>>, vector<1x16x1024xf32>
    %23 = vector.shape_cast %22 : vector<1x16x1024xf32> to vector<16x1024xf32>
    %24 = vector.shape_cast %21 : vector<16x1024xf32> to vector<1x16x1024xf32>
    tpu.vector_store %arg6[%c0_10, %c0_11, %c0_12], %24 {strides = array<i32>} : memref<1x16x1024xf32, #tpu.memory_space<vmem>>, vector<1x16x1024xf32>,
    return
  }
  func.func @transform_0(%arg0: i32, %arg1: i32) -> (i32, i32, i32) {
    %c0_i32 = arith.constant 0 : i32
    %c0_i32_0 = arith.constant 0 : i32
    return %arg0, %c0_i32, %arg1 : i32, i32, i32
  }
  func.func @transform_1(%arg0: i32, %arg1: i32) -> (i32, i32, i32) {
    %c0_i32 = arith.constant 0 : i32
    %c0_i32_0 = arith.constant 0 : i32
    %c0_i32_1 = arith.constant 0 : i32
    return %arg0, %c0_i32, %c0_i32_0 : i32, i32, i32
  }
  func.func @transform_2(%arg0: i32, %arg1: i32) -> (i32, i32) {
    %c0_i32 = arith.constant 0 : i32
    %c0_i32_0 = arith.constant 0 : i32
    %c0_i32_1 = arith.constant 0 : i32
    return %c0_i32, %c0_i32_0 : i32, i32
  }
  func.func @transform_3(%arg0: i32, %arg1: i32) -> (i32, i32) {
    %c0_i32 = arith.constant 0 : i32
    %c0_i32_0 = arith.constant 0 : i32
    %c0_i32_1 = arith.constant 0 : i32
    return %c0_i32, %c0_i32_0 : i32, i32
  }
  func.func @transform_4(%arg0: i32, %arg1: i32) -> (i32, i32, i32) {
    %c0_i32 = arith.constant 0 : i32
    %c0_i32_0 = arith.constant 0 : i32
    return %arg0, %c0_i32, %arg1 : i32, i32, i32
  }
}

</mosaic_0001>

<bundles_post_ra>
// kernel: channel_spatial_se_3d.2
= control target key start
LH: loop header
LB: loop body
LE: loop exit
PB: predicated region body
PF: predicated region fallthrough
CT: control target
= control target key end

     0   :  { %s447_s6 = smov 0   ;;  %s449_s7 = smov 0   ;;  %s581_s0 = inlined_call_operand.vmem [shape: f32[2,16,4096], index: 0, kind: input, shape index: {}]   ;;  %s582_s1 = inlined_call_operand.vmem [shape: f32[2,16,1], index: 1, kind: output, shape index: {}]  }
   0x1   :  { %s451_s8 = smov 0   ;;  %s453_s9 = smov 0  }
   0x2   :  { %s455_s10 = smov 0   ;;  %s457_s11 = smov 0  }
   0x3   :  { %s459_s12 = smov 0  }
   0x4 LB: > { %s20_s13 = sadd.s32 1, %s426_s10  ;;  %s23_s14 = sadd.s32 1, %s430_s11  ;;  %s434_s12 = sphi %s459_s12, %s11_s12   ;;  %s430_s11 = sphi %s457_s11, %s588_s11   ;;  %s426_s10 = sphi %s455_s10, %s587_s10   ;;  %s422_s9 = sphi %s453_s9, %s586_s9   ;;  %s418_s8 = sphi %s451_s8, %s585_s8   ;;  %s414_s7 = sphi %s449_s7, %s584_s7   ;;  %s410_s6 = sphi %s447_s6, %s583_s6  }
   0x5   : > { %p21_p0 = scmp.ge.s32.totalorder %s20_s13, 4  ;;  %p39_p1 = scmp.ne.s32.totalorder %s414_s7, %s410_s6 }
   0x6   : > { %p40_p2 = scmp.eq.s32.totalorder %s434_s12, 0  ;;  %s32_s18 = sadd.s32 1, %s414_s7 }
   0x7   : > { %s590_s13 = smov (%p21_p0, %s20_s13), 0  ;;  %s592_s14 = smov (!%p21_p0, %s23_s14), %s430_s11 }
   0x8   : > { %p41_p3 = por %p40_p2, %p39_p1  ;;  %p25_p4 = scmp.ge.s32.totalorder %s592_s14, 2 }
   0x9   : > { %s28_s15 = ssub.s32 %s426_s10, %s590_s13  ;;  %p310_p6 = scmp.ge.s32.totalorder %s434_s12, 8 }
   0xa   : > { %s594_s14 = smov (%p25_p4, %s592_s14), 0 }
   0xb   : > { %s27_s16 = ssub.s32 %s430_s11, %s594_s14  ;;  %91 = sbr.rel (%p310_p6) target bundleno = 33 (0x21), region = 16 }
   0xc   : > { %s29_s17 = sor.u32 %s28_s15, %s27_s16 }
   0xd   : > { %p30_p5 = scmp.eq.s32.totalorder %s29_s17, 0 }
   0xf   : > { %s498_s19 = scalar_select %p30_p5, %s414_s7, %s32_s18  }
  0x12   : > { %94 = sbr.rel (!%p41_p3) target bundleno = 33 (0x21), region = 20  ;;  %s96_s20 = sand.u32 (%p41_p3), 1, %s414_s7  }
  0x13   : > { %s312_s21 = sshll.u32 (%p41_p3), %s426_s10, 3  ;;  %s311_s22 = sshll.u32 (%p41_p3), %s96_s20, 7 }
  0x14   : > { %s313_s23 = sshll.u32 (%p41_p3), %s430_s11, 6  ;;  %s98_s29 = scalar_lea.vmem (%p41_p3), [#allocation2], %s311_s22 }
  0x15   : > { %s101_s24 = sadd.s32 (%p41_p3), %s313_s23, %s312_s21 }
  0x16   : > { %s314_s25 = sshll.u32 (%p41_p3), %s101_s24, 3 }
  0x17   : > { %s507_s28 = scalar_lea.vmem (%p41_p3), %s581_s0, %s314_s25 }
  0x18   : > { %v116_v0 = vld [vmem:[%s507_s28] sm:$0xff] (%p41_p3)  ;;  %v118_v1 = vld [vmem:[%s507_s28 + $0x8] sm:$0xff] (%p41_p3)  ;;  %v120_v2 = vld [vmem:[%s507_s28 + $0x10] sm:$0xff] (%p41_p3) }
  0x19   : > { %117 = vst [vmem:[%s98_s29] sm:$0xff] %v116_v0  ;;  %119 = vst [vmem:[%s98_s29 + $0x8] sm:$0xff] %v118_v1  ;;  %v122_v3 = vld [vmem:[%s507_s28 + $0x18] sm:$0xff]  ;;  %v124_v4 = vld [vmem:[%s507_s28 + $0x20] sm:$0xff] }
  0x1a   : > { %121 = vst [vmem:[%s98_s29 + $0x10] sm:$0xff] %v120_v2  ;;  %v126_v5 = vld [vmem:[%s507_s28 + $0x28] sm:$0xff]  ;;  %123 = vst [vmem:[%s98_s29 + $0x18] sm:$0xff] %v122_v3  ;;  %v128_v6 = vld [vmem:[%s507_s28 + $0x30] sm:$0xff] }
  0x1b   : > { %125 = vst [vmem:[%s98_s29 + $0x20] sm:$0xff] %v124_v4  ;;  %127 = vst [vmem:[%s98_s29 + $0x28] sm:$0xff] %v126_v5  ;;  %v130_v7 = vld [vmem:[%s507_s28 + $0x38] sm:$0xff]  ;;  %v132_v8 = vld [vmem:[%s507_s28 + $0x100] sm:$0xff] }
  0x1c   : > { %129 = vst [vmem:[%s98_s29 + $0x30] sm:$0xff] %v128_v6  ;;  %131 = vst [vmem:[%s98_s29 + $0x38] sm:$0xff] %v130_v7  ;;  %v134_v9 = vld [vmem:[%s507_s28 + $0x108] sm:$0xff]  ;;  %v136_v10 = vld [vmem:[%s507_s28 + $0x110] sm:$0xff] }
  0x1d   : > { %133 = vst [vmem:[%s98_s29 + $0x40] sm:$0xff] %v132_v8  ;;  %v138_v11 = vld [vmem:[%s507_s28 + $0x118] sm:$0xff]  ;;  %135 = vst [vmem:[%s98_s29 + $0x48] sm:$0xff] %v134_v9  ;;  %v140_v12 = vld [vmem:[%s507_s28 + $0x120] sm:$0xff] }
  0x1e   : > { %137 = vst [vmem:[%s98_s29 + $0x50] sm:$0xff] %v136_v10  ;;  %139 = vst [vmem:[%s98_s29 + $0x58] sm:$0xff] %v138_v11  ;;  %v142_v13 = vld [vmem:[%s507_s28 + $0x128] sm:$0xff]  ;;  %v144_v14 = vld [vmem:[%s507_s28 + $0x130] sm:$0xff] }
  0x1f   : > { %141 = vst [vmem:[%s98_s29 + $0x60] sm:$0xff] %v140_v12  ;;  %143 = vst [vmem:[%s98_s29 + $0x68] sm:$0xff] %v142_v13  ;;  %v146_v15 = vld [vmem:[%s507_s28 + $0x138] sm:$0xff] }
  0x20   : > { %145 = vst [vmem:[%s98_s29 + $0x70] sm:$0xff] %v144_v14  ;;  %147 = vst [vmem:[%s98_s29 + $0x78] sm:$0xff] %v146_v15 }
  0x21 PF: > { %p315_p7 = scmp.ge.s32.totalorder %s434_s12, 1  ;;  %p152_p8 = scmp.lt.s32.totalorder %s434_s12, 9 }
  0x23   : > { %p153_p9 = pnand %p315_p7, %p152_p8 }
  0x24   : > { %s159_s30 = sand.u32 (!%p153_p9), 1, %s410_s6   ;;  %p179_p10 = scmp.lt.s32.totalorder (!%p153_p9), %s422_s9, 1 }
  0x25   : > { %156 = sbr.rel (%p153_p9) target bundleno = 215 (0xd7), region = 43  ;;  %s316_s2 = sshll.u32 (!%p153_p9), %s159_s30, 7 }
  0x26   : > { %s535_s16 = scalar_lea.vmem (!%p153_p9), [#allocation2], %s316_s2  ;;  %p319_p11 = scmp.ne.s32.totalorder (!%p153_p9), %s418_s8, 0 }
  0x2c   : > { %s596_s9 = smov (!%p179_p10, %s422_s9), 1  ;;  %187 = sbr.rel (%p319_p11) target bundleno = 51 (0x33), region = 51 }
  0x2d   : > { %s322_s3 = sshll.u32 %s596_s9, 4  ;;  %vm188_vm0 = vcmask (!%p319_p11), 7168   ;;  %v436_v16 = vmov (!%p319_p11), 0.0  }
  0x2e   : > { %s533_s15 = scalar_lea.vmem %s582_s1, %s322_s3 }
  0x2f   : > { %189 = vst.msk [vmem:[%s533_s15] sm:$0xff] (!%p319_p11), %vm188_vm0, %v436_v16  ;;  %190 = vst.msk [vmem:[%s533_s15 + $0x8] sm:$0xff] (!%p319_p11), %vm188_vm0, %v436_v16 }
  0x33 PF: > { %v191_v17 = vld [vmem:[%s535_s16] sm:$0xff]  ;;  %v192_v18 = vld [vmem:[%s535_s16 + $0x8] sm:$0xff]  ;;  %v193_v19 = vld [vmem:[%s535_s16 + $0x10] sm:$0xff]  ;;  %vm229_vm1 = vcmask 7168  }
  0x34   : > { %v209_v20 = vadd.f32 %v192_v18, %v191_v17  ;;  %v194_v21 = vld [vmem:[%s535_s16 + $0x18] sm:$0xff]  ;;  %v199_v22 = vld [vmem:[%s535_s16 + $0x40] sm:$0xff]  ;;  %v200_v24 = vld [vmem:[%s535_s16 + $0x48] sm:$0xff] }
  0x35   : > { %v201_v25 = vld [vmem:[%s535_s16 + $0x50] sm:$0xff]  ;;  %v195_v26 = vld [vmem:[%s535_s16 + $0x20] sm:$0xff]  ;;  %v218_v27 = vadd.f32 %v200_v24, %v199_v22  ;;  %v202_v29 = vld [vmem:[%s535_s16 + $0x58] sm:$0xff] }
  0x36   : > { %v210_v23 = vadd.f32 %v209_v20, %v193_v19  ;;  %v196_v30 = vld [vmem:[%s535_s16 + $0x28] sm:$0xff]  ;;  %v203_v33 = vld [vmem:[%s535_s16 + $0x60] sm:$0xff]  ;;  %v197_v34 = vld [vmem:[%s535_s16 + $0x30] sm:$0xff] }
  0x37   : > { %v219_v31 = vadd.f32 %v218_v27, %v201_v25  ;;  %v204_v37 = vld [vmem:[%s535_s16 + $0x68] sm:$0xff]  ;;  %v198_v38 = vld [vmem:[%s535_s16 + $0x38] sm:$0xff]  ;;  %v205_v41 = vld [vmem:[%s535_s16 + $0x70] sm:$0xff] }
  0x38   : > { %v211_v28 = vadd.f32 %v210_v23, %v194_v21  ;;  %v206_v44 = vld [vmem:[%s535_s16 + $0x78] sm:$0xff]  ;;  %v207_v47 = vld [vmem:[%s533_s15] sm:$0xff]  ;;  %v208_v50 = vld [vmem:[%s533_s15 + $0x8] sm:$0xff] }
  0x39   : > { %v220_v35 = vadd.f32 %v219_v31, %v202_v29 }
  0x3a   : > { %v212_v32 = vadd.f32 %v211_v28, %v195_v26 }
  0x3b   : > { %v221_v39 = vadd.f32 %v220_v35, %v203_v33 }
  0x3c   : > { %v213_v36 = vadd.f32 %v212_v32, %v196_v30 }
  0x3d   : > { %v222_v42 = vadd.f32 %v221_v39, %v204_v37 }
  0x3e   : > { %v214_v40 = vadd.f32 %v213_v36, %v197_v34 }
  0x3f   : > { %v223_v45 = vadd.f32 %v222_v42, %v205_v41 }
  0x40   : > { %v215_v43 = vadd.f32 %v214_v40, %v198_v38 }
  0x41   : > { %v224_v46 = vadd.f32 %v223_v45, %v206_v44 }
  0x42   : > { %216 = vadd.xlane.f32.xlu0 %v215_v43 }
  0x46   : > { %225 = vadd.xlane.f32.xlu0 %v224_v46 }
  0xcf   : > { %v217_v48 = vpop.xlane.xlu0 %216 }
  0xd0   : > { %v227_v49 = vadd.f32 %v217_v48, %v207_v47 }
  0xd2   : > { %230 = vst.msk [vmem:[%s533_s15] sm:$0xff] %vm229_vm1, %v227_v49 }
  0xd3   : > { %v226_v51 = vpop.xlane.xlu0 %225 }
  0xd4   : > { %v228_v52 = vadd.f32 %v226_v51, %v208_v50 }
  0xd6   : > { %231 = vst.msk [vmem:[%s533_s15 + $0x8] sm:$0xff] %vm229_vm1, %v228_v52 }
  0xd7 PF: > { %s11_s12 = sadd.s32 1, %s434_s12   ;;  %s583_s6 = smov %s414_s7 }
  0xd8   : > { %p8_p12 = scmp.ge.s32.totalorder %s11_s12, 10   ;;  %s584_s7 = smov %s498_s19 }
  0xd9   : > { %s585_s8 = smov %s426_s10  ;;  %s586_s9 = smov %s430_s11 }
  0xda   : > { %s587_s10 = smov %s590_s13  ;;  %s588_s11 = smov %s594_s14 }
  0xdb   :  { %10 = sbr.rel (!%p8_p12) target bundleno = 4 (0x4), region = 86 }

// kernel: channel_spatial_se_3d.3
= control target key start
LH: loop header
LB: loop body
LE: loop exit
PB: predicated region body
PF: predicated region fallthrough
CT: control target
= control target key end

     0   :  { %s1127_s0 = inlined_call_operand.vmem [shape: f32[2,16,4096], index: 0, kind: input, shape index: {}]   ;;  %s1128_s1 = inlined_call_operand.vmem [shape: f32[2,16,1], index: 1, kind: input, shape index: {}]   ;;  %s1129_s2 = inlined_call_operand.vmem [shape: f32[16,1], index: 2, kind: input, shape index: {}]   ;;  %s1130_s3 = inlined_call_operand.<no memory space> [shape: f32[1,1], index: 3, kind: input, shape index: {}]   ;;  %s1131_s4 = inlined_call_operand.vmem [shape: f32[2,16,4096], index: 4, kind: output, shape index: {}]  }
   0x1   :  { %v9_v0 = vstv %s1130_s3 }
   0x2   :  { %10 = vst [vmem:[#allocation2] sm:$0x1] %v9_v0 }
   0x3   :  { %s875_s17 = smov 0   ;;  %s877_s18 = smov 0  }
   0x4   :  { %s879_s19 = smov 0   ;;  %s881_s20 = smov 0  }
   0x5   :  { %s883_s21 = smov 0   ;;  %s885_s22 = smov 0  }
   0x6   :  { %s887_s23 = smov 0  }
   0x7 LB: > { %s25_s3 = sadd.s32 1, %s836_s21  ;;  %s28_s24 = sadd.s32 1, %s840_s22  ;;  %s844_s23 = sphi %s887_s23, %s16_s23   ;;  %s840_s22 = sphi %s885_s22, %s1138_s22   ;;  %s836_s21 = sphi %s883_s21, %s1137_s21   ;;  %s832_s20 = sphi %s881_s20, %s1136_s20   ;;  %s828_s19 = sphi %s879_s19, %s1135_s19   ;;  %s824_s18 = sphi %s877_s18, %s1134_s18   ;;  %s820_s17 = sphi %s875_s17, %s1133_s17  }
   0x8   : > { %p26_p0 = scmp.ge.s32.totalorder %s25_s3, 4  ;;  %s671_s25 = sadd.s32 4294967295, %s844_s23  }
   0x9   : > { %p44_p1 = scmp.ne.s32.totalorder %s824_s18, %s820_s17  ;;  %p45_p2 = scmp.eq.s32.totalorder %s844_s23, 0 }
   0xa   : > { %s1140_s3 = smov (%p26_p0, %s25_s3), 0  ;;  %s1142_s24 = smov (!%p26_p0, %s28_s24), %s840_s22 }
   0xb   : > { %p30_p3 = scmp.ge.s32.totalorder %s1142_s24, 2  ;;  %p144_p4 = scmp.eq.s32.totalorder %s671_s25, 7 }
   0xc   : > { %s33_s26 = ssub.s32 %s836_s21, %s1140_s3  ;;  %p46_p5 = por %p45_p2, %p44_p1 }
   0xd   : > { %s1144_s24 = smov (%p30_p3, %s1142_s24), 0  ;;  %p923_p6 = por %p144_p4, %p44_p1 }
   0xe   : > { %s32_s28 = ssub.s32 %s840_s22, %s1144_s24  ;;  %s37_s30 = sadd.s32 1, %s824_s18 }
   0xf   : > { %s34_s29 = sor.u32 %s33_s26, %s32_s28  ;;  %p674_p8 = scmp.ge.s32.totalorder %s844_s23, 8 }
  0x10   : > { %p35_p7 = scmp.eq.s32.totalorder %s34_s29, 0 }
  0x11   : > { %172 = sbr.rel (%p674_p8) target bundleno = 39 (0x27), region = 24 }
  0x12   : > { %s931_s5 = scalar_select %p35_p7, %s824_s18, %s37_s30  }
  0x18   : > { %175 = sbr.rel (!%p46_p5) target bundleno = 39 (0x27), region = 28  ;;  %s177_s6 = sand.u32 (%p46_p5), 1, %s824_s18  }
  0x19   : > { %s676_s7 = sshll.u32 (%p46_p5), %s836_s21, 3  ;;  %s675_s8 = sshll.u32 (%p46_p5), %s177_s6, 7 }
  0x1a   : > { %s677_s9 = sshll.u32 (%p46_p5), %s840_s22, 6  ;;  %s179_s15 = scalar_lea.vmem (%p46_p5), [#allocation3], %s675_s8 }
  0x1b   : > { %s182_s10 = sadd.s32 (%p46_p5), %s677_s9, %s676_s7 }
  0x1c   : > { %s678_s11 = sshll.u32 (%p46_p5), %s182_s10, 3 }
  0x1d   : > { %s940_s14 = scalar_lea.vmem (%p46_p5), %s1127_s0, %s678_s11 }
  0x1e   : > { %v197_v1 = vld [vmem:[%s940_s14] sm:$0xff] (%p46_p5)  ;;  %v199_v2 = vld [vmem:[%s940_s14 + $0x8] sm:$0xff] (%p46_p5)  ;;  %v201_v3 = vld [vmem:[%s940_s14 + $0x10] sm:$0xff] (%p46_p5) }
  0x1f   : > { %198 = vst [vmem:[%s179_s15] sm:$0xff] %v197_v1  ;;  %200 = vst [vmem:[%s179_s15 + $0x8] sm:$0xff] %v199_v2  ;;  %v203_v4 = vld [vmem:[%s940_s14 + $0x18] sm:$0xff]  ;;  %v205_v5 = vld [vmem:[%s940_s14 + $0x20] sm:$0xff] }
  0x20   : > { %202 = vst [vmem:[%s179_s15 + $0x10] sm:$0xff] %v201_v3  ;;  %v207_v6 = vld [vmem:[%s940_s14 + $0x28] sm:$0xff]  ;;  %204 = vst [vmem:[%s179_s15 + $0x18] sm:$0xff] %v203_v4  ;;  %v209_v7 = vld [vmem:[%s940_s14 + $0x30] sm:$0xff] }
  0x21   : > { %206 = vst [vmem:[%s179_s15 + $0x20] sm:$0xff] %v205_v5  ;;  %208 = vst [vmem:[%s179_s15 + $0x28] sm:$0xff] %v207_v6  ;;  %v211_v8 = vld [vmem:[%s940_s14 + $0x38] sm:$0xff]  ;;  %v213_v9 = vld [vmem:[%s940_s14 + $0x100] sm:$0xff] }
  0x22   : > { %210 = vst [vmem:[%s179_s15 + $0x30] sm:$0xff] %v209_v7  ;;  %212 = vst [vmem:[%s179_s15 + $0x38] sm:$0xff] %v211_v8  ;;  %v215_v10 = vld [vmem:[%s940_s14 + $0x108] sm:$0xff]  ;;  %v217_v11 = vld [vmem:[%s940_s14 + $0x110] sm:$0xff] }
  0x23   : > { %214 = vst [vmem:[%s179_s15 + $0x40] sm:$0xff] %v213_v9  ;;  %v219_v12 = vld [vmem:[%s940_s14 + $0x118] sm:$0xff]  ;;  %216 = vst [vmem:[%s179_s15 + $0x48] sm:$0xff] %v215_v10  ;;  %v221_v13 = vld [vmem:[%s940_s14 + $0x120] sm:$0xff] }
  0x24   : > { %218 = vst [vmem:[%s179_s15 + $0x50] sm:$0xff] %v217_v11  ;;  %220 = vst [vmem:[%s179_s15 + $0x58] sm:$0xff] %v219_v12  ;;  %v223_v14 = vld [vmem:[%s940_s14 + $0x128] sm:$0xff]  ;;  %v225_v15 = vld [vmem:[%s940_s14 + $0x130] sm:$0xff] }
  0x25   : > { %222 = vst [vmem:[%s179_s15 + $0x60] sm:$0xff] %v221_v13  ;;  %224 = vst [vmem:[%s179_s15 + $0x68] sm:$0xff] %v223_v14  ;;  %v227_v16 = vld [vmem:[%s940_s14 + $0x138] sm:$0xff] }
  0x26   : > { %226 = vst [vmem:[%s179_s15 + $0x70] sm:$0xff] %v225_v15  ;;  %228 = vst [vmem:[%s179_s15 + $0x78] sm:$0xff] %v227_v16 }
  0x27 PF: > { %p679_p9 = scmp.ge.s32.totalorder %s844_s23, 1  ;;  %p241_p10 = scmp.lt.s32.totalorder %s844_s23, 9 }
  0x29   : > { %p242_p11 = pnand %p679_p9, %p241_p10 }
  0x2a   : > { %v300_v17 = vld [vmem:[%s1129_s2] sm:$0xff] (!%p242_p11)  ;;  %p278_p12 = scmp.lt.s32.totalorder (!%p242_p11), %s832_s20, 1  ;;  %v846_v19 = vmov (!%p242_p11), 0   ;;  %v301_v20 = vld [vmem:[%s1129_s2 + $0x8] sm:$0xff] (!%p242_p11)  ;;  %s248_s9 = sand.u32 (!%p242_p11), 1, %s820_s17   ;;  %v390_v23 = vlaneseq (!%p242_p11) }
  0x2b   : > { %245 = sbr.rel (%p242_p11) target bundleno = 242 (0xf2), region = 55  ;;  %v384_v18 = vld [vmem:[#allocation2] sm:$0x1] (!%p242_p11)  ;;  %756 = vset.pattern.permute.xlu0 (!%p242_p11), %v846_v19  ;;  %757 = vset.pattern.permute.xlu1 (!%p242_p11), %v846_v19  ;;  %s972_s10 = sshll.u32 (!%p242_p11), %s248_s9, 7 }
  0x2c   : > { %304 = vperm.xlu0 (!%p242_p11), %756, %v300_v17   ;;  %387 = vperm.xlu1 (!%p242_p11), %757, %v384_v18   ;;  %v391_v24 = vshrl.u32 (!%p242_p11), %v390_v23, 7  ;;  %s250_s11 = scalar_lea.vmem (!%p242_p11), [#allocation3], %s972_s10  ;;  %s1056_s17 = scalar_lea.vmem (!%p242_p11), [#allocation4], %s972_s10 }
  0x2d   : > { %v975_v25 = vld [vmem:[%s250_s11] sm:$0xff] (!%p242_p11)  ;;  %v977_v26 = vld [vmem:[%s250_s11 + $0x8] sm:$0xff] (!%p242_p11)  ;;  %v983_v30 = vld [vmem:[%s250_s11 + $0x10] sm:$0xff] (!%p242_p11) }
  0x2e   : > { %v979_v28 = vld [vmem:[%s250_s11 + $0x40] sm:$0xff] (!%p242_p11)  ;;  %v981_v29 = vld [vmem:[%s250_s11 + $0x48] sm:$0xff] (!%p242_p11)  ;;  %v985_v31 = vld [vmem:[%s250_s11 + $0x18] sm:$0xff] (!%p242_p11)  ;;  %v392_v39 = vsub.s32 (!%p242_p11), 0, %v391_v24 }
  0x2f   : > { %v987_v32 = vld [vmem:[%s250_s11 + $0x20] sm:$0xff] (!%p242_p11)  ;;  %v989_v33 = vld [vmem:[%s250_s11 + $0x28] sm:$0xff] (!%p242_p11)  ;;  %v991_v34 = vld [vmem:[%s250_s11 + $0x30] sm:$0xff] (!%p242_p11) }
  0x30   : > { %309 = vperm.xlu0 (!%p242_p11), %756, %v301_v20   ;;  %v993_v35 = vld [vmem:[%s250_s11 + $0x38] sm:$0xff] (!%p242_p11)  ;;  %v995_v36 = vld [vmem:[%s250_s11 + $0x50] sm:$0xff] (!%p242_p11)  ;;  %v999_v38 = vld [vmem:[%s250_s11 + $0x60] sm:$0xff] (!%p242_p11) }
  0x31   : > { %v997_v37 = vld [vmem:[%s250_s11 + $0x58] sm:$0xff] (!%p242_p11)  ;;  %v1001_v40 = vld [vmem:[%s250_s11 + $0x68] sm:$0xff] (!%p242_p11)  ;;  %v1003_v41 = vld [vmem:[%s250_s11 + $0x70] sm:$0xff] (!%p242_p11) }
  0x32   : > { %s279_s26 = scalar_select %p278_p12, %s832_s20, 1  ;;  %v1005_v42 = vld [vmem:[%s250_s11 + $0x78] sm:$0xff] }
  0x33   : > { %s693_s12 = sshll.u32 (%p923_p6), %s828_s19, 3  ;;  %s694_s13 = sshll.u32 (%p923_p6), %s832_s20, 6 }
  0x34   : > { %s698_s30 = sshll.u32 %s279_s26, 4  ;;  %s535_s27 = sadd.s32 (%p923_p6), %s694_s13, %s693_s12 }
  0x35   : > { %s282_s8 = scalar_lea.vmem %s1128_s1, %s698_s30  ;;  %s695_s14 = sshll.u32 (%p923_p6), %s535_s27, 3 }
  0x36   : > { %v450_v21 = vld [vmem:[%s282_s8] sm:$0xff]  ;;  %v451_v22 = vld [vmem:[%s282_s8 + $0x8] sm:$0xff]  ;;  %s537_s25 = scalar_lea.vmem (%p923_p6), %s1131_s4, %s695_s14 }
  0x37   : > { %454 = vperm.xlu1 %757, %v450_v21   ;;  %459 = vperm.xlu0 %756, %v451_v22  }
  0xab   : > { %v305_v27 = vpop.permute.xlu0 %304  ;;  %v388_v4 = vpop.permute.xlu1 %387 }
  0xac   : > { %v312_v43 = vmul.f32 %v305_v27, %v975_v25  ;;  %v313_v44 = vmul.f32 %v305_v27, %v977_v26  ;;  %v314_v45 = vmul.f32 %v305_v27, %v983_v30  ;;  %v315_v46 = vmul.f32 %v305_v27, %v985_v31 }
  0xad   : > { %v316_v48 = vmul.f32 %v305_v27, %v987_v32  ;;  %v317_v49 = vmul.f32 %v305_v27, %v989_v33  ;;  %v318_v50 = vmul.f32 %v305_v27, %v991_v34  ;;  %v319_v51 = vmul.f32 %v305_v27, %v993_v35 }
  0xae   : > { %v393_v5 = vrot.slane %v388_v4, %v392_v39 }
  0xaf   : > { %v310_v47 = vpop.permute.xlu0 %309 }
  0xb0   : > { %v320_v52 = vmul.f32 %v310_v47, %v979_v28  ;;  %v321_v53 = vmul.f32 %v310_v47, %v981_v29  ;;  %v322_v54 = vmul.f32 %v310_v47, %v995_v36  ;;  %v323_v55 = vmul.f32 %v310_v47, %v997_v37 }
  0xb1   : > { %v324_v56 = vmul.f32 %v310_v47, %v999_v38  ;;  %v325_v57 = vmul.f32 %v310_v47, %v1001_v40  ;;  %v326_v58 = vmul.f32 %v310_v47, %v1003_v41  ;;  %v327_v59 = vmul.f32 %v310_v47, %v1005_v42 }
  0xb2   : > { %v328_v60 = vadd.f32 %v320_v52, %v312_v43  ;;  %v335_v61 = vadd.f32 %v321_v53, %v313_v44  ;;  %v342_v62 = vadd.f32 %v322_v54, %v314_v45  ;;  %v349_v63 = vadd.f32 %v323_v55, %v315_v46 }
  0xb3   : > { %v356_v0 = vadd.f32 %v324_v56, %v316_v48  ;;  %v363_v1 = vadd.f32 %v325_v57, %v317_v49  ;;  %v370_v2 = vadd.f32 %v326_v58, %v318_v50  ;;  %v377_v3 = vadd.f32 %v327_v59, %v319_v51 }
  0xb4   : > { %v329_v6 = vrot.slane %v328_v60, 4  ;;  %v336_v7 = vrot.slane %v335_v61, 4  ;;  %v343_v8 = vrot.slane %v342_v62, 4  ;;  %v350_v9 = vrot.slane %v349_v63, 4 }
  0xb5   : > { %v357_v10 = vrot.slane %v356_v0, 4  ;;  %v364_v11 = vrot.slane %v363_v1, 4  ;;  %v371_v12 = vrot.slane %v370_v2, 4  ;;  %v378_v13 = vrot.slane %v377_v3, 4 }
  0xb6   : > { %v330_v14 = vadd.f32 %v329_v6, %v328_v60  ;;  %v337_v15 = vadd.f32 %v336_v7, %v335_v61  ;;  %v344_v16 = vadd.f32 %v343_v8, %v342_v62  ;;  %v351_v17 = vadd.f32 %v350_v9, %v349_v63 }
  0xb7   : > { %v358_v18 = vadd.f32 %v357_v10, %v356_v0  ;;  %v365_v19 = vadd.f32 %v364_v11, %v363_v1  ;;  %v372_v20 = vadd.f32 %v371_v12, %v370_v2  ;;  %v379_v21 = vadd.f32 %v378_v13, %v377_v3 }
  0xb8   : > { %v331_v22 = vrot.slane %v330_v14, 2  ;;  %v338_v23 = vrot.slane %v337_v15, 2  ;;  %v345_v24 = vrot.slane %v344_v16, 2  ;;  %v352_v27 = vrot.slane %v351_v17, 2 }
  0xb9   : > { %v359_v39 = vrot.slane %v358_v18, 2  ;;  %v366_v43 = vrot.slane %v365_v19, 2  ;;  %v373_v44 = vrot.slane %v372_v20, 2  ;;  %v380_v45 = vrot.slane %v379_v21, 2 }
  0xba   : > { %v332_v46 = vadd.f32 %v331_v22, %v330_v14  ;;  %v339_v47 = vadd.f32 %v338_v23, %v337_v15  ;;  %v346_v48 = vadd.f32 %v345_v24, %v344_v16  ;;  %v353_v49 = vadd.f32 %v352_v27, %v351_v17 }
  0xbb   : > { %v360_v50 = vadd.f32 %v359_v39, %v358_v18  ;;  %v367_v51 = vadd.f32 %v366_v43, %v365_v19  ;;  %v374_v52 = vadd.f32 %v373_v44, %v372_v20  ;;  %v381_v53 = vadd.f32 %v380_v45, %v379_v21 }
  0xbc   : > { %v333_v54 = vrot.slane %v332_v46, 1  ;;  %v340_v55 = vrot.slane %v339_v47, 1  ;;  %v347_v56 = vrot.slane %v346_v48, 1  ;;  %v354_v57 = vrot.slane %v353_v49, 1 }
  0xbd   : > { %v361_v58 = vrot.slane %v360_v50, 1  ;;  %v368_v59 = vrot.slane %v367_v51, 1  ;;  %v375_v60 = vrot.slane %v374_v52, 1  ;;  %v382_v61 = vrot.slane %v381_v53, 1 }
  0xbe   : > { %v334_v62 = vadd.f32 %v333_v54, %v332_v46  ;;  %v341_v63 = vadd.f32 %v340_v55, %v339_v47  ;;  %v348_v0 = vadd.f32 %v347_v56, %v346_v48  ;;  %v355_v1 = vadd.f32 %v354_v57, %v353_v49  ;;  %v455_v55 = vpop.permute.xlu1 %454 }
  0xbf   : > { %v362_v2 = vadd.f32 %v361_v58, %v360_v50  ;;  %v369_v3 = vadd.f32 %v368_v59, %v367_v51  ;;  %v376_v4 = vadd.f32 %v375_v60, %v374_v52  ;;  %v383_v6 = vadd.f32 %v382_v61, %v381_v53  ;;  %v460_v53 = vpop.permute.xlu0 %459 }
  0xc0   : > { %v394_v7 = vadd.f32 %v393_v5, %v334_v62  ;;  %v395_v8 = vadd.f32 %v393_v5, %v341_v63  ;;  %v396_v9 = vadd.f32 %v393_v5, %v348_v0  ;;  %v397_v10 = vadd.f32 %v393_v5, %v355_v1 }
  0xc1   : > { %v398_v11 = vadd.f32 %v393_v5, %v362_v2  ;;  %v399_v12 = vadd.f32 %v393_v5, %v369_v3  ;;  %v400_v13 = vadd.f32 %v393_v5, %v376_v4  ;;  %v401_v17 = vadd.f32 %v393_v5, %v383_v6 }
  0xc2   : > { %v684_v14 = vmul.f32 -1.442695, %v394_v7  ;;  %v685_v15 = vmul.f32 -1.442695, %v395_v8  ;;  %v686_v16 = vmul.f32 -1.442695, %v396_v9  ;;  %v470_v56 = vmul.f32 %v460_v53, %v979_v28 }
  0xc3   : > { %v687_v18 = vmul.f32 -1.442695, %v397_v10  ;;  %v688_v19 = vmul.f32 -1.442695, %v398_v11  ;;  %v689_v20 = vmul.f32 -1.442695, %v399_v12  ;;  %v471_v57 = vmul.f32 %v460_v53, %v981_v29 }
  0xc4   : > { %758 = vpow2.f32 %v684_v14  ;;  %v690_v21 = vmul.f32 -1.442695, %v400_v13  ;;  %v691_v22 = vmul.f32 -1.442695, %v401_v17  ;;  %v472_v58 = vmul.f32 %v460_v53, %v995_v36 }
  0xc5   : > { %760 = vpow2.f32 %v685_v15  ;;  %v473_v59 = vmul.f32 %v460_v53, %v997_v37  ;;  %v474_v60 = vmul.f32 %v460_v53, %v999_v38  ;;  %v1029_v61 = vmul.f32 %v460_v53, %v1001_v40 }
  0xc6   : > { %762 = vpow2.f32 %v686_v16  ;;  %v1032_v62 = vmul.f32 %v460_v53, %v1003_v41  ;;  %v1035_v63 = vmul.f32 %v460_v53, %v1005_v42  ;;  %v462_v1 = vmul.f32 %v455_v55, %v975_v25 }
  0xc7   : > { %764 = vpow2.f32 %v687_v18  ;;  %v463_v2 = vmul.f32 %v455_v55, %v977_v26  ;;  %v464_v3 = vmul.f32 %v455_v55, %v983_v30  ;;  %v465_v4 = vmul.f32 %v455_v55, %v985_v31 }
  0xc8   : > { %766 = vpow2.f32 %v688_v19  ;;  %v466_v7 = vmul.f32 %v455_v55, %v987_v32  ;;  %v467_v8 = vmul.f32 %v455_v55, %v989_v33  ;;  %v468_v12 = vmul.f32 %v455_v55, %v991_v34 }
  0xc9   : > { %768 = vpow2.f32 %v689_v20  ;;  %v469_v13 = vmul.f32 %v455_v55, %v993_v35 }
  0xca   : > { %770 = vpow2.f32 %v690_v21 }
  0xcb   : > { %772 = vpow2.f32 %v691_v22 }
  0xce   : > { %v759_v23 = vpop.eup %758 }
  0xcf   : > { %v761_v24 = vpop.eup %760  ;;  %v426_v27 = vadd.f32 1.0, %v759_v23 }
  0xd0   : > { %v763_v39 = vpop.eup %762  ;;  %v427_v43 = vadd.f32 1.0, %v761_v24 }
  0xd1   : > { %v765_v44 = vpop.eup %764  ;;  %v428_v5 = vadd.f32 1.0, %v763_v39  ;;  %774 = vrcp.f32 %v426_v27 }
  0xd2   : > { %v767_v45 = vpop.eup %766  ;;  %v429_v46 = vadd.f32 1.0, %v765_v44  ;;  %776 = vrcp.f32 %v427_v43 }
  0xd3   : > { %v769_v47 = vpop.eup %768  ;;  %v430_v48 = vadd.f32 1.0, %v767_v45  ;;  %778 = vrcp.f32 %v428_v5 }
  0xd4   : > { %v771_v49 = vpop.eup %770  ;;  %v431_v50 = vadd.f32 1.0, %v769_v47  ;;  %780 = vrcp.f32 %v429_v46 }
  0xd5   : > { %v773_v51 = vpop.eup %772  ;;  %v432_v52 = vadd.f32 1.0, %v771_v49  ;;  %782 = vrcp.f32 %v430_v48 }
  0xd6   : > { %v433_v54 = vadd.f32 1.0, %v773_v51  ;;  %784 = vrcp.f32 %v431_v50 }
  0xd7   : > { %786 = vrcp.f32 %v432_v52 }
  0xd8   : > { %788 = vrcp.f32 %v433_v54 }
  0xdb   : > { %v775_v0 = vpop.eup %774 }
  0xdc   : > { %v777_v6 = vpop.eup %776  ;;  %v478_v9 = vmul.f32 %v775_v0, %v975_v25  ;;  %v486_v10 = vmul.f32 %v775_v0, %v979_v28 }
  0xdd   : > { %v779_v11 = vpop.eup %778  ;;  %v479_v14 = vmul.f32 %v777_v6, %v977_v26  ;;  %v487_v15 = vmul.f32 %v777_v6, %v981_v29 }
  0xde   : > { %v781_v16 = vpop.eup %780  ;;  %v480_v17 = vmul.f32 %v779_v11, %v983_v30  ;;  %v488_v18 = vmul.f32 %v779_v11, %v995_v36  ;;  %v494_v19 = vmax.f32 %v462_v1, %v478_v9  ;;  %v502_v20 = vmax.f32 %v470_v56, %v486_v10 }
  0xdf   : > { %v783_v25 = vpop.eup %782  ;;  %v481_v28 = vmul.f32 %v781_v16, %v985_v31  ;;  %v489_v21 = vmul.f32 %v781_v16, %v997_v37  ;;  %v495_v22 = vmax.f32 %v463_v2, %v479_v14  ;;  %v503_v23 = vmax.f32 %v471_v57, %v487_v15 }
  0xe0   : > { %v785_v24 = vpop.eup %784  ;;  %v482_v26 = vmul.f32 %v783_v25, %v987_v32  ;;  %v490_v29 = vmul.f32 %v783_v25, %v999_v38  ;;  %v496_v27 = vmax.f32 %v464_v3, %v480_v17  ;;  %v504_v39 = vmax.f32 %v472_v58, %v488_v18  ;;  %510 = vst [vmem:[%s1056_s17] sm:$0xff] %v494_v19 }
  0xe1   : > { %518 = vst [vmem:[%s1056_s17 + $0x40] sm:$0xff] %v502_v20  ;;  %v787_v30 = vpop.eup %786  ;;  %v483_v31 = vmul.f32 %v785_v24, %v989_v33  ;;  %v491_v36 = vmul.f32 %v785_v24, %v1001_v40  ;;  %v497_v32 = vmax.f32 %v465_v4, %v481_v28  ;;  %v505_v37 = vmax.f32 %v473_v59, %v489_v21 }
  0xe2   : > { %511 = vst [vmem:[%s1056_s17 + $0x8] sm:$0xff] %v495_v22  ;;  %519 = vst [vmem:[%s1056_s17 + $0x48] sm:$0xff] %v503_v23  ;;  %v789_v38 = vpop.eup %788  ;;  %v484_v43 = vmul.f32 %v787_v30, %v991_v34  ;;  %v492_v44 = vmul.f32 %v787_v30, %v1003_v41  ;;  %v498_v5 = vmax.f32 %v466_v7, %v482_v26  ;;  %532 = sbr.rel (!%p923_p6) target bundleno = 242 (0xf2), region = 63 }
  0xe3   : > { %v506_v45 = vmax.f32 %v474_v60, %v490_v29  ;;  %512 = vst [vmem:[%s1056_s17 + $0x10] sm:$0xff] %v496_v27  ;;  %520 = vst [vmem:[%s1056_s17 + $0x50] sm:$0xff] %v504_v39  ;;  %v485_v33 = vmul.f32 %v789_v38, %v993_v35  ;;  %v493_v40 = vmul.f32 %v789_v38, %v1005_v42 }
  0xe4   : > { %v499_v46 = vmax.f32 %v467_v8, %v483_v31  ;;  %v507_v47 = vmax.f32 %v1029_v61, %v491_v36  ;;  %513 = vst [vmem:[%s1056_s17 + $0x18] sm:$0xff] %v497_v32  ;;  %521 = vst [vmem:[%s1056_s17 + $0x58] sm:$0xff] %v505_v37  ;;  %v500_v34 = vmax.f32 %v468_v12, %v484_v43 }
  0xe5   : > { %v508_v41 = vmax.f32 %v1032_v62, %v492_v44  ;;  %514 = vst [vmem:[%s1056_s17 + $0x20] sm:$0xff] %v498_v5  ;;  %522 = vst [vmem:[%s1056_s17 + $0x60] sm:$0xff] %v506_v45  ;;  %v501_v48 = vmax.f32 %v469_v13, %v485_v33  ;;  %v509_v49 = vmax.f32 %v1035_v63, %v493_v40 }
  0xe6   : > { %515 = vst [vmem:[%s1056_s17 + $0x28] sm:$0xff] %v499_v46  ;;  %523 = vst [vmem:[%s1056_s17 + $0x68] sm:$0xff] %v507_v47 }
  0xe7   : > { %516 = vst [vmem:[%s1056_s17 + $0x30] sm:$0xff] %v500_v34  ;;  %524 = vst [vmem:[%s1056_s17 + $0x70] sm:$0xff] %v508_v41  ;;  %v550_v35 = vld [vmem:[%s1056_s17] sm:$0xff] (%p923_p6) }
  0xe8   : > { %517 = vst [vmem:[%s1056_s17 + $0x38] sm:$0xff] %v501_v48  ;;  %525 = vst [vmem:[%s1056_s17 + $0x78] sm:$0xff] %v509_v49  ;;  %v566_v56 = vld [vmem:[%s1056_s17 + $0x40] sm:$0xff] (%p923_p6) }
  0xe9   : > { %v552_v42 = vld [vmem:[%s1056_s17 + $0x8] sm:$0xff]  ;;  %551 = vst [vmem:[%s537_s25] sm:$0xff] %v550_v35  ;;  %567 = vst [vmem:[%s537_s25 + $0x100] sm:$0xff] %v566_v56 }
  0xea   : > { %v554_v50 = vld [vmem:[%s1056_s17 + $0x10] sm:$0xff]  ;;  %v568_v57 = vld [vmem:[%s1056_s17 + $0x48] sm:$0xff]  ;;  %553 = vst [vmem:[%s537_s25 + $0x8] sm:$0xff] %v552_v42 }
  0xeb   : > { %v556_v51 = vld [vmem:[%s1056_s17 + $0x18] sm:$0xff]  ;;  %v570_v58 = vld [vmem:[%s1056_s17 + $0x50] sm:$0xff]  ;;  %555 = vst [vmem:[%s537_s25 + $0x10] sm:$0xff] %v554_v50  ;;  %569 = vst [vmem:[%s537_s25 + $0x108] sm:$0xff] %v568_v57 }
  0xec   : > { %v558_v52 = vld [vmem:[%s1056_s17 + $0x20] sm:$0xff]  ;;  %v572_v59 = vld [vmem:[%s1056_s17 + $0x58] sm:$0xff]  ;;  %557 = vst [vmem:[%s537_s25 + $0x18] sm:$0xff] %v556_v51  ;;  %571 = vst [vmem:[%s537_s25 + $0x110] sm:$0xff] %v570_v58 }
  0xed   : > { %v560_v53 = vld [vmem:[%s1056_s17 + $0x28] sm:$0xff]  ;;  %559 = vst [vmem:[%s537_s25 + $0x20] sm:$0xff] %v558_v52  ;;  %573 = vst [vmem:[%s537_s25 + $0x118] sm:$0xff] %v572_v59  ;;  %v574_v60 = vld [vmem:[%s1056_s17 + $0x60] sm:$0xff] }
  0xee   : > { %v562_v54 = vld [vmem:[%s1056_s17 + $0x30] sm:$0xff]  ;;  %561 = vst [vmem:[%s537_s25 + $0x28] sm:$0xff] %v560_v53  ;;  %v576_v61 = vld [vmem:[%s1056_s17 + $0x68] sm:$0xff]  ;;  %575 = vst [vmem:[%s537_s25 + $0x120] sm:$0xff] %v574_v60 }
  0xef   : > { %v564_v55 = vld [vmem:[%s1056_s17 + $0x38] sm:$0xff]  ;;  %563 = vst [vmem:[%s537_s25 + $0x30] sm:$0xff] %v562_v54  ;;  %v578_v62 = vld [vmem:[%s1056_s17 + $0x70] sm:$0xff]  ;;  %577 = vst [vmem:[%s537_s25 + $0x128] sm:$0xff] %v576_v61 }
  0xf0   : > { %565 = vst [vmem:[%s537_s25 + $0x38] sm:$0xff] %v564_v55  ;;  %579 = vst [vmem:[%s537_s25 + $0x130] sm:$0xff] %v578_v62  ;;  %v580_v63 = vld [vmem:[%s1056_s17 + $0x78] sm:$0xff] }
  0xf1   : > { %581 = vst [vmem:[%s537_s25 + $0x138] sm:$0xff] %v580_v63 }
  0xf2 PF: > { %s16_s23 = sadd.s32 1, %s844_s23   ;;  %s1133_s17 = smov %s824_s18 }
  0xf3   : > { %p13_p13 = scmp.ge.s32.totalorder %s16_s23, 10   ;;  %s1134_s18 = smov %s931_s5 }
  0xf4   : > { %s1135_s19 = smov %s836_s21  ;;  %s1136_s20 = smov %s840_s22 }
  0xf5   : > { %s1137_s21 = smov %s1140_s3  ;;  %s1138_s22 = smov %s1144_s24 }
  0xf6   :  { %15 = sbr.rel (!%p13_p13) target bundleno = 7 (0x7), region = 120 }

</bundles_post_ra>
